<compile_context>
chip_gen: v5e
topology: v5e:2x2
jax: 0.10.0
libtpu: 0.0.40
codegen_flags: <defaults>
</compile_context>

<pallas_src>
import math
from functools import partial

import jax
import jax.numpy as jnp
import numpy as np
from jax.experimental import pallas as pl
from jax.experimental.pallas import tpu as pltpu


def _make_kernel(dim):
    def kernel(norm_pow_ref, inv_s2_ref, x_ref, mu_ref, g0_ref, g1_ref, g2d_ref):
        g = pl.program_id(0)
        norm_pow = norm_pow_ref[g]          # (1/(sigma*sqrt(2*pi)))**dim   (SMEM scalar)
        inv_s2 = inv_s2_ref[g]              # 1/sigma**2                    (SMEM scalar)
        neg_half_inv_s2 = -0.5 * inv_s2     # hoisted scalar

        # One fused pass over d: per-dim diff + squared-distance accumulation.
        diffs = []
        e = None
        for d in range(dim):
            diff_d = x_ref[d] - mu_ref[0, d]          # [tt, ts]  (lane broadcast of mu)
            diffs.append(diff_d)
            sq = diff_d * diff_d
            e = sq if e is None else e + sq

        # Single transcendental per element.
        g0 = norm_pow * jnp.exp(neg_half_inv_s2 * e)  # [tt, ts]
        g0_ref[0] = g0

        # g1[d]      = -(x_d - mu_d)/sigma^2 * g0
        # g2diag[d]  = (-1/sigma^2 + ((x_d - mu_d)/sigma^2)^2) * g0
        for d in range(dim):
            s = diffs[d] * inv_s2
            g1_ref[0, d] = -s * g0
            g2d_ref[0, d] = (s * s - inv_s2) * g0

    return kernel


@partial(jax.jit, static_argnames=("tile_t", "tile_s"))
def gaussian_td_all(x, mu, sigma, *, tile_t=128, tile_s=2048):
    """x: [t, sample, dim] f32, mu: [gauss, t, dim] f32, sigma: [gauss] f32.

    Returns (g0, g1, g2) with the PyTorch module's shapes:
      g0: [gauss, t, sample]
      g1: [gauss, t, sample, dim]
      g2: [gauss, t, sample, dim, dim]   (zero off-diagonal, like the module)
    """
    t, sample, dim = x.shape
    gauss = mu.shape[0]

    # Glue: layout transforms + per-gaussian scalar precompute.
    x_k = jnp.transpose(x, (2, 0, 1)).astype(jnp.float32)               # [dim, t, sample]
    mu_k = jnp.transpose(mu, (0, 2, 1))[..., None].astype(jnp.float32)  # [gauss, dim, t, 1]
    sigma = sigma.astype(jnp.float32)
    norm = 1.0 / (sigma * math.sqrt(2.0 * math.pi))                     # [gauss]
    norm_pow = (norm ** dim).astype(jnp.float32)                        # [gauss]
    inv_s2 = (1.0 / (sigma * sigma)).astype(jnp.float32)                # [gauss]

    # Tile selection: sample on lanes (multiple of 128 or full), t on sublanes
    # (multiple of 8 or full).  Non-divisible edges are handled by masked blocks.
    tt = t if t <= tile_t else tile_t
    ts = sample if sample <= tile_s else tile_s
    nt = pl.cdiv(t, tt)
    ns = pl.cdiv(sample, ts)

    grid_spec = pltpu.PrefetchScalarGridSpec(
        num_scalar_prefetch=2,
        grid=(gauss, nt, ns),
        in_specs=[
            # x: re-read per gaussian, tiled over (t, sample)
            pl.BlockSpec((dim, tt, ts), lambda g, ti, si, np_ref, is_ref: (0, ti, si)),
            # mu: per gaussian, tiled over t, lane-broadcast dim of size 1
            pl.BlockSpec((1, dim, tt, 1), lambda g, ti, si, np_ref, is_ref: (g, 0, ti, 0)),
        ],
        out_specs=[
            pl.BlockSpec((1, tt, ts), lambda g, ti, si, np_ref, is_ref: (g, ti, si)),
            pl.BlockSpec((1, dim, tt, ts), lambda g, ti, si, np_ref, is_ref: (g, 0, ti, si)),
            pl.BlockSpec((1, dim, tt, ts), lambda g, ti, si, np_ref, is_ref: (g, 0, ti, si)),
        ],
    )

    n_elem = gauss * t * sample
    cost = pl.CostEstimate(
        flops=n_elem * (8 * dim + 4),
        transcendentals=n_elem,
        bytes_accessed=4 * (gauss * dim * t * sample          # x (re-read per gaussian)
                            + gauss * dim * t                 # mu
                            + n_elem * (1 + 2 * dim)),        # g0 + g1 + g2-diag writes
    )

    g0, g1_k, g2d_k = pl.pallas_call(
        _make_kernel(dim),
        grid_spec=grid_spec,
        out_shape=(
            jax.ShapeDtypeStruct((gauss, t, sample), jnp.float32),
            jax.ShapeDtypeStruct((gauss, dim, t, sample), jnp.float32),
            jax.ShapeDtypeStruct((gauss, dim, t, sample), jnp.float32),
        ),
        compiler_params=pltpu.CompilerParams(
            dimension_semantics=("parallel", "parallel", "parallel"),
            vmem_limit_bytes=32 * 1024 * 1024,
        ),
        cost_estimate=cost,
    )(norm_pow, inv_s2, x_k, mu_k)

    # Back to the PyTorch axis conventions (done in XLA, outside the kernel).
    g1 = jnp.transpose(g1_k, (0, 2, 3, 1))            # [gauss, t, sample, dim]
    g2_diag = jnp.transpose(g2d_k, (0, 2, 3, 1))      # [gauss, t, sample, dim]
    eye = jnp.eye(dim, dtype=jnp.float32)
    g2 = g2_diag[..., :, None] * eye                  # [gauss, t, sample, dim, dim]
    return g0, g1, g2


class GaussianTD:
    """JAX/Pallas mirror of the PyTorch Gaussian_TD module (forward only)."""

    def __init__(self, mu, sigma):
        self.mu = mu          # [gauss, t, dim]
        self.sigma = sigma    # [gauss]
        self.gauss_num, self.t_num, self.dim = mu.shape
        self._cache = None    # caches (g0, g1, g2) like the module caches g0

    def forward(self, x, diff_order=0):
        if self._cache is None:
            self._cache = gaussian_td_all(x, self.mu, self.sigma)
        g0, g1, g2 = self._cache
        if diff_order == 0:
            return g0
        elif diff_order == 1:
            return g1
        elif diff_order == 2:
            return g2
        raise RuntimeError(
            "higher order derivatives of the gaussian has not been implemented!")


def _reference_all(x, mu, sigma):
    """Pure-JAX reference reproducing the PyTorch math."""
    dim = x.shape[-1]
    sg = sigma[:, None, None]                         # [gauss,1,1]
    diff = x[None] - mu[:, :, None, :]                # [gauss,t,sample,dim]
    g0 = jnp.prod(
        (1.0 / (sg[..., None] * math.sqrt(2.0 * math.pi)))
        * jnp.exp(-0.5 * diff ** 2 / sg[..., None] ** 2),
        axis=-1,
    )                                                 # [gauss,t,sample]
    g1 = -diff / sg[..., None] ** 2 * g0[..., None]   # [gauss,t,sample,dim]
    g2 = jnp.zeros(g0.shape + (dim, dim), jnp.float32)
    for k in range(dim):
        g2 = g2.at[..., k, k].set(
            (-1.0 / sg ** 2 + (diff[..., k] / sg ** 2) ** 2) * g0)
    return g0, g1, g2


if __name__ == "__main__":
    # small shapes consistent with the module: x [t, sample, dim]
    gauss_num, t_num, sample, dim = 4, 8, 128, 2

    key = jax.random.PRNGKey(0)
    kx, kmu, ksig = jax.random.split(key, 3)
    x = jax.random.normal(kx, (t_num, sample, dim), dtype=jnp.float32)
    mu = jax.random.normal(kmu, (gauss_num, t_num, dim), dtype=jnp.float32)
    sigma = jax.random.uniform(ksig, (gauss_num,), dtype=jnp.float32,
                               minval=0.5, maxval=1.5)

    model = GaussianTD(mu, sigma)
    g0 = jax.block_until_ready(model.forward(x, diff_order=0))
    g1 = jax.block_until_ready(model.forward(x, diff_order=1))
    g2 = jax.block_until_ready(model.forward(x, diff_order=2))

    # sanity check against a pure-JAX reference of the torch math
    r0, r1, r2 = _reference_all(x, mu, sigma)
    np.testing.assert_allclose(np.asarray(g0), np.asarray(r0), rtol=1e-5, atol=1e-6)
    np.testing.assert_allclose(np.asarray(g1), np.asarray(r1), rtol=1e-5, atol=1e-6)
    np.testing.assert_allclose(np.asarray(g2), np.asarray(r2), rtol=1e-5, atol=1e-6)

    assert g0.shape == (gauss_num, t_num, sample)
    assert g1.shape == (gauss_num, t_num, sample, dim)
    assert g2.shape == (gauss_num, t_num, sample, dim, dim)

    print("KERNEL_OK")
</pallas_src>

<mosaic_0001>
module attributes {stable_mosaic.version = 11 : i64} {
  func.func @kernel(%arg0: i32, %arg1: i32, %arg2: i32, %arg3: memref<4xf32, #tpu.memory_space<smem>>, %arg4: memref<4xf32, #tpu.memory_space<smem>>, %arg5: memref<2x8x128xf32, #tpu.memory_space<vmem>>, %arg6: memref<1x2x8x1xf32, #tpu.memory_space<vmem>>, %arg7: memref<1x8x128xf32, #tpu.memory_space<vmem>>, %arg8: memref<1x2x8x128xf32, #tpu.memory_space<vmem>>, %arg9: memref<1x2x8x128xf32, #tpu.memory_space<vmem>>) attributes {dimension_semantics = [#tpu.dimension_semantics<parallel>, #tpu.dimension_semantics<parallel>, #tpu.dimension_semantics<parallel>], iteration_bounds = array<i64: 4, 1, 1>, scalar_prefetch = 2 : i64, scratch_operands = 0 : i64, tpu.core_type = #tpu.core_type<tc>, window_params = [{transform_indices = @transform_0, window_bounds = array<i64: 2, 8, 128>}, {transform_indices = @transform_1, window_bounds = array<i64: 1, 2, 8, 1>}, {transform_indices = @transform_2, window_bounds = array<i64: 1, 8, 128>}, {transform_indices = @transform_3, window_bounds = array<i64: 1, 2, 8, 128>}, {transform_indices = @transform_4, window_bounds = array<i64: 1, 2, 8, 128>}]} {
    %0 = arith.index_cast %arg0 : i32 to index
    %1 = memref.load %arg3[%0] : memref<4xf32, #tpu.memory_space<smem>>
    %2 = arith.index_cast %arg0 : i32 to index
    %3 = memref.load %arg4[%2] : memref<4xf32, #tpu.memory_space<smem>>
    %cst = arith.constant -5.000000e-01 : f32
    %4 = arith.mulf %cst, %3 : f32
    %c0 = arith.constant 0 : index
    %c0_0 = arith.constant 0 : index
    %c0_1 = arith.constant 0 : index
    %5 = vector.load %arg5[%c0, %c0_0, %c0_1] : memref<2x8x128xf32, #tpu.memory_space<vmem>>, vector<1x8x128xf32>
    %6 = vector.shape_cast %5 : vector<1x8x128xf32> to vector<8x128xf32>
    %c0_2 = arith.constant 0 : index
    %c0_3 = arith.constant 0 : index
    %c0_4 = arith.constant 0 : index
    %c0_5 = arith.constant 0 : index
    %7 = vector.load %arg6[%c0_2, %c0_3, %c0_4, %c0_5] : memref<1x2x8x1xf32, #tpu.memory_space<vmem>>, vector<1x1x8x1xf32>
    %8 = vector.shape_cast %7 : vector<1x1x8x1xf32> to vector<8x1xf32>
    %9 = vector.broadcast %8 : vector<8x1xf32> to vector<8x128xf32>
    %10 = arith.subf %6, %9 : vector<8x128xf32>
    %11 = arith.mulf %10, %10 : vector<8x128xf32>
    %c1 = arith.constant 1 : index
    %c0_6 = arith.constant 0 : index
    %c0_7 = arith.constant 0 : index
    %12 = vector.load %arg5[%c1, %c0_6, %c0_7] : memref<2x8x128xf32, #tpu.memory_space<vmem>>, vector<1x8x128xf32>
    %13 = vector.shape_cast %12 : vector<1x8x128xf32> to vector<8x128xf32>
    %c0_8 = arith.constant 0 : index
    %c1_9 = arith.constant 1 : index
    %c0_10 = arith.constant 0 : index
    %c0_11 = arith.constant 0 : index
    %14 = vector.load %arg6[%c0_8, %c1_9, %c0_10, %c0_11] : memref<1x2x8x1xf32, #tpu.memory_space<vmem>>, vector<1x1x8x1xf32>
    %15 = vector.shape_cast %14 : vector<1x1x8x1xf32> to vector<8x1xf32>
    %16 = vector.broadcast %15 : vector<8x1xf32> to vector<8x128xf32>
    %17 = arith.subf %13, %16 : vector<8x128xf32>
    %18 = arith.mulf %17, %17 : vector<8x128xf32>
    %19 = arith.addf %11, %18 : vector<8x128xf32>
    %20 = vector.broadcast %4 : f32 to vector<8x128xf32>
    %21 = arith.mulf %20, %19 : vector<8x128xf32>
    %22 = math.exp %21 : vector<8x128xf32>
    %23 = vector.broadcast %1 : f32 to vector<8x128xf32>
    %24 = arith.mulf %23, %22 : vector<8x128xf32>
    %c0_12 = arith.constant 0 : index
    %c0_13 = arith.constant 0 : index
    %c0_14 = arith.constant 0 : index
    %25 = vector.load %arg7[%c0_12, %c0_13, %c0_14] : memref<1x8x128xf32, #tpu.memory_space<vmem>>, vector<1x8x128xf32>
    %26 = vector.shape_cast %25 : vector<1x8x128xf32> to vector<8x128xf32>
    %27 = vector.shape_cast %24 : vector<8x128xf32> to vector<1x8x128xf32>
    tpu.vector_store %arg7[%c0_12, %c0_13, %c0_14], %27 {strides = array<i32>} : memref<1x8x128xf32, #tpu.memory_space<vmem>>, vector<1x8x128xf32>,
    %28 = vector.broadcast %3 : f32 to vector<8x128xf32>
    %29 = arith.mulf %10, %28 : vector<8x128xf32>
    %cst_15 = arith.constant 0.000000e+00 : f32
    %30 = vector.broadcast %cst_15 : f32 to vector<8x128xf32>
    %31 = arith.subf %30, %29 : vector<8x128xf32>
    %32 = arith.mulf %31, %24 : vector<8x128xf32>
    %c0_16 = arith.constant 0 : index
    %c0_17 = arith.constant 0 : index
    %c0_18 = arith.constant 0 : index
    %c0_19 = arith.constant 0 : index
    %33 = vector.load %arg8[%c0_16, %c0_17, %c0_18, %c0_19] : memref<1x2x8x128xf32, #tpu.memory_space<vmem>>, vector<1x1x8x128xf32>
    %34 = vector.shape_cast %33 : vector<1x1x8x128xf32> to vector<8x128xf32>
    %35 = vector.shape_cast %32 : vector<8x128xf32> to vector<1x1x8x128xf32>
    tpu.vector_store %arg8[%c0_16, %c0_17, %c0_18, %c0_19], %35 {strides = array<i32>} : memref<1x2x8x128xf32, #tpu.memory_space<vmem>>, vector<1x1x8x128xf32>,
    %36 = arith.mulf %29, %29 : vector<8x128xf32>
    %37 = vector.broadcast %3 : f32 to vector<8x128xf32>
    %38 = arith.subf %36, %37 : vector<8x128xf32>
    %39 = arith.mulf %38, %24 : vector<8x128xf32>
    %c0_20 = arith.constant 0 : index
    %c0_21 = arith.constant 0 : index
    %c0_22 = arith.constant 0 : index
    %c0_23 = arith.constant 0 : index
    %40 = vector.load %arg9[%c0_20, %c0_21, %c0_22, %c0_23] : memref<1x2x8x128xf32, #tpu.memory_space<vmem>>, vector<1x1x8x128xf32>
    %41 = vector.shape_cast %40 : vector<1x1x8x128xf32> to vector<8x128xf32>
    %42 = vector.shape_cast %39 : vector<8x128xf32> to vector<1x1x8x128xf32>
    tpu.vector_store %arg9[%c0_20, %c0_21, %c0_22, %c0_23], %42 {strides = array<i32>} : memref<1x2x8x128xf32, #tpu.memory_space<vmem>>, vector<1x1x8x128xf32>,
    %43 = vector.broadcast %3 : f32 to vector<8x128xf32>
    %44 = arith.mulf %17, %43 : vector<8x128xf32>
    %cst_24 = arith.constant 0.000000e+00 : f32
    %45 = vector.broadcast %cst_24 : f32 to vector<8x128xf32>
    %46 = arith.subf %45, %44 : vector<8x128xf32>
    %47 = arith.mulf %46, %24 : vector<8x128xf32>
    %c0_25 = arith.constant 0 : index
    %c1_26 = arith.constant 1 : index
    %c0_27 = arith.constant 0 : index
    %c0_28 = arith.constant 0 : index
    %48 = vector.load %arg8[%c0_25, %c1_26, %c0_27, %c0_28] : memref<1x2x8x128xf32, #tpu.memory_space<vmem>>, vector<1x1x8x128xf32>
    %49 = vector.shape_cast %48 : vector<1x1x8x128xf32> to vector<8x128xf32>
    %50 = vector.shape_cast %47 : vector<8x128xf32> to vector<1x1x8x128xf32>
    tpu.vector_store %arg8[%c0_25, %c1_26, %c0_27, %c0_28], %50 {strides = array<i32>} : memref<1x2x8x128xf32, #tpu.memory_space<vmem>>, vector<1x1x8x128xf32>,
    %51 = arith.mulf %44, %44 : vector<8x128xf32>
    %52 = vector.broadcast %3 : f32 to vector<8x128xf32>
    %53 = arith.subf %51, %52 : vector<8x128xf32>
    %54 = arith.mulf %53, %24 : vector<8x128xf32>
    %c0_29 = arith.constant 0 : index
    %c1_30 = arith.constant 1 : index
    %c0_31 = arith.constant 0 : index
    %c0_32 = arith.constant 0 : index
    %55 = vector.load %arg9[%c0_29, %c1_30, %c0_31, %c0_32] : memref<1x2x8x128xf32, #tpu.memory_space<vmem>>, vector<1x1x8x128xf32>
    %56 = vector.shape_cast %55 : vector<1x1x8x128xf32> to vector<8x128xf32>
    %57 = vector.shape_cast %54 : vector<8x128xf32> to vector<1x1x8x128xf32>
    tpu.vector_store %arg9[%c0_29, %c1_30, %c0_31, %c0_32], %57 {strides = array<i32>} : memref<1x2x8x128xf32, #tpu.memory_space<vmem>>, vector<1x1x8x128xf32>,
    return
  }
  func.func @transform_0(%arg0: i32, %arg1: i32, %arg2: i32, %arg3: memref<4xf32, #tpu.memory_space<smem>>, %arg4: memref<4xf32, #tpu.memory_space<smem>>) -> (i32, i32, i32) {
    %c0_i32 = arith.constant 0 : i32
    %c0_i32_0 = arith.constant 0 : i32
    return %c0_i32, %arg1, %arg2 : i32, i32, i32
  }
  func.func @transform_1(%arg0: i32, %arg1: i32, %arg2: i32, %arg3: memref<4xf32, #tpu.memory_space<smem>>, %arg4: memref<4xf32, #tpu.memory_space<smem>>) -> (i32, i32, i32, i32) {
    %c0_i32 = arith.constant 0 : i32
    %c0_i32_0 = arith.constant 0 : i32
    %c0_i32_1 = arith.constant 0 : i32
    return %arg0, %c0_i32, %arg1, %c0_i32_0 : i32, i32, i32, i32
  }
  func.func @transform_2(%arg0: i32, %arg1: i32, %arg2: i32, %arg3: memref<4xf32, #tpu.memory_space<smem>>, %arg4: memref<4xf32, #tpu.memory_space<smem>>) -> (i32, i32, i32) {
    %c0_i32 = arith.constant 0 : i32
    return %arg0, %arg1, %arg2 : i32, i32, i32
  }
  func.func @transform_3(%arg0: i32, %arg1: i32, %arg2: i32, %arg3: memref<4xf32, #tpu.memory_space<smem>>, %arg4: memref<4xf32, #tpu.memory_space<smem>>) -> (i32, i32, i32, i32) {
    %c0_i32 = arith.constant 0 : i32
    %c0_i32_0 = arith.constant 0 : i32
    return %arg0, %c0_i32, %arg1, %arg2 : i32, i32, i32, i32
  }
  func.func @transform_4(%arg0: i32, %arg1: i32, %arg2: i32, %arg3: memref<4xf32, #tpu.memory_space<smem>>, %arg4: memref<4xf32, #tpu.memory_space<smem>>) -> (i32, i32, i32, i32) {
    %c0_i32 = arith.constant 0 : i32
    %c0_i32_0 = arith.constant 0 : i32
    return %arg0, %c0_i32, %arg1, %arg2 : i32, i32, i32, i32
  }
}

</mosaic_0001>

<bundles_post_ra>
// kernel: gaussian_td_all.1
= control target key start
LH: loop header
LB: loop body
LE: loop exit
PB: predicated region body
PF: predicated region fallthrough
CT: control target
= control target key end

     0   :  { %s799_s27 = smov [#allocation3]   ;;  %s800_s28 = smov [#allocation4]   ;;  %s966_s0 = inlined_call_operand.vmem [shape: f32[4], index: 0, kind: input, shape index: {}]   ;;  %s967_s2 = inlined_call_operand.vmem [shape: f32[2,8,128], index: 2, kind: input, shape index: {}]   ;;  %s968_s3 = inlined_call_operand.vmem [shape: f32[4,2,8,1], index: 3, kind: input, shape index: {}]   ;;  %s969_s4 = inlined_call_operand.hbm [shape: f32[4,8,128], index: 4, kind: output, shape index: {0}]   ;;  %s970_s5 = inlined_call_operand.vmem [shape: f32[4,2,8,128], index: 5, kind: output, shape index: {1}]   ;;  %s971_s6 = inlined_call_operand.vmem [shape: f32[4,2,8,128], index: 6, kind: output, shape index: {2}]   ;;  %s972_s1 = inlined_call_operand.vmem [shape: f32[4], index: 1, kind: input, shape index: {}]  }
   0x1   :  { %s13_s23 = sshll.u32 %s966_s0, 4  ;;  %s18_s26 = sshll.u32 %s972_s1, 4  ;;  %s14_s23 = int_to_ptr.vmem [resolvable:$true] %s13_s23  ;;  %s19_s26 = int_to_ptr.vmem [resolvable:$true] %s18_s26 }
   0x2   :  { %16 = dma.vmem_to_smem %s14_s23, 16, %s799_s27, [#allocation2] }
   0x3   :  { %21 = dma.vmem_to_smem %s19_s26, 16, %s800_s28, [#allocation2] }
   0x4   :  { %769 = dma.done.wait [#allocation2], 32 }
   0x5   :  { %770 = vsyncadd [#allocation2], 4294967264 }
   0x6   :  { %24 = sfence }
   0x7   :  { %25 = vsyncpa [#allocation6], 0 }
   0x8   :  { %27 = vsyncpa [#allocation6 + $0x1], 0  ;;  %s843_s29 = smov 0   ;;  %s845_s30 = smov 0  }
   0x9   :  { %s847_s0 = smov 0   ;;  %s849_s7 = smov 0  }
   0xa   :  { %s851_s1 = smov 0   ;;  %s853_s8 = smov 0  }
   0xb LB: > { %s608_s9 = sadd.s32 4294967295, %s797_s8   ;;  %s609_s10 = sadd.s32 4294967294, %s797_s8   ;;  %s797_s8 = sphi %s853_s8, %s33_s8   ;;  %s793_s1 = sphi %s851_s1, %s979_s1   ;;  %s789_s7 = sphi %s849_s7, %s978_s7   ;;  %s785_s0 = sphi %s847_s0, %s977_s0   ;;  %s781_s30 = sphi %s845_s30, %s976_s30   ;;  %s777_s29 = sphi %s843_s29, %s975_s29  }
   0xc   : > { %s52_s11 = sadd.s32 1, %s793_s1  ;;  %s119_s12 = sadd.s32 1, %s785_s0 }
   0xd   : > { %p54_p0 = scmp.ge.s32.totalorder %s52_s11, 4  ;;  %p129_p1 = scmp.ne.s32.totalorder %s785_s0, %s781_s30 }
   0xe   : > { %p130_p2 = scmp.eq.s32.totalorder %s608_s9, 3  ;;  %p135_p3 = scmp.ne.s32.totalorder %s781_s30, %s777_s29 }
   0xf   : > { %s981_s11 = smov (%p54_p0, %s52_s11), 0  ;;  %p136_p5 = scmp.eq.s32.totalorder %s609_s10, 3 }
  0x10   : > { %p883_p4 = por %p130_p2, %p129_p1  ;;  %s112_s14 = ssub.s32 %s793_s1, %s981_s11 }
  0x11   : > { %p613_p6 = scmp.ge.s32.totalorder %s797_s8, 1  ;;  %p117_p7 = scmp.eq.s32.totalorder %s112_s14, 0 }
  0x12   : > { %p890_p8 = por %p136_p5, %p135_p3  ;;  %p235_p9 = scmp.lt.s32.totalorder %s797_s8, 5 }
  0x13   : > { %s896_s16 = scalar_select %p117_p7, %s785_s0, %s119_s12  }
  0x14   : > { %p236_p10 = pnand %p613_p6, %p235_p9 }
  0x15   : > { %p300_p11 = scmp.lt.s32.totalorder (!%p236_p10), %s789_s7, 3  ;;  %s331_s22 = sld [smem:[#allocation4 + %s789_s7]] (!%p236_p10) }
  0x16   : > { %239 = sbr.rel (%p236_p10) target bundleno = 180 (0xb4), region = 28  ;;  %s264_s28 = sand.u32 (!%p236_p10), 1, %s781_s30  }
  0x17   : > { %s330_s9 = sld [smem:[#allocation3 + %s789_s7]] (!%p236_p10)  ;;  %s614_s10 = sshll.u32 (!%p236_p10), %s264_s28, 3 }
  0x18   : > { %s626_s12 = sshll.u32 (!%p236_p10), %s789_s7, 3  ;;  %s266_s20 = scalar_lea.vmem (!%p236_p10), [#allocation5], %s614_s10 }
  0x19   : > { %s415_s19 = scalar_lea.hbm (!%p236_p10), %s969_s4, %s626_s12 }
  0x1b   : > { %v801_v0 = vmov 0   ;;  %s301_s17 = scalar_select %p300_p11, %s789_s7, 3  ;;  %v333_v4 = vld [vmem:[%s967_s2] sm:$0xff]  ;;  %v621_v5 = vld [vmem:[%s967_s2 + $0x8] sm:$0xff]  ;;  %v361_v13 = vstv %s331_s22 }
  0x1c   : > { %690 = vset.pattern.permute.xlu0 %v801_v0  ;;  %s332_s27 = smul.f32 -0.5, %s331_s22  ;;  %s419_s22 = sshll.u32 %s415_s19, 4  ;;  %s420_s22 = int_to_ptr.hbm [resolvable:$true] %s419_s22 }
  0x1d   : > { %s900_s18 = sshll.u32 %s301_s17, 4  ;;  %v358_v19 = vstv %s330_s9  ;;  %s381_s9 = scalar_lea.sflag [#allocation6], %s264_s28 }
  0x1e   : > { %s307_s21 = scalar_lea.vmem %s968_s3, %s900_s18  ;;  %v354_v11 = vstv %s332_s27  ;;  %s318_s24 = scalar_lea.vmem %s970_s5, %s900_s18 }
  0x1f   : > { %v334_v1 = vld [vmem:[%s307_s21] sm:$0xff]  ;;  %v622_v2 = vld [vmem:[%s307_s21 + $0x8] sm:$0xff]  ;;  %s921_s21 = sshll.u32 %s266_s20, 4  ;;  %s329_s27 = scalar_lea.vmem %s971_s6, %s900_s18  ;;  %s418_s21 = int_to_ptr.vmem [resolvable:$true] %s921_s21 }
  0x20   : > { %337 = vperm.xlu0 %690, %v334_v1   ;;  %s731_s10 = sshra.s32 %s420_s22, 4  ;;  %s737_s19 = scalar_lea.hbm %s969_s4, 32  ;;  %s732_s10 = int_to_ptr.hbm [resolvable:$true] %s731_s10 }
  0x21   : > { %s733_s12 = scalar_lea.hbm %s732_s10, 8  ;;  %p738_p1 = scmp.lt.s32.totalorder %s732_s10, %s969_s4 }
  0x22   : > { %p734_p12 = scmp.ne.s32.totalorder %s732_s10, %s733_s12  ;;  %p739_p2 = scmp.lt.s32.totalorder %s737_s19, %s733_s12 }
  0x24   : > { %p735_p13 = pnand %p734_p12, %p883_p4  ;;  %p740_p3 = por %p739_p2, %p738_p1 }
  0x26   : > { %p736_p0 = pneg %p735_p13 }
  0x28   : > { %348 = vperm.xlu0 %690, %v622_v2   ;;  %p741_p5 = pnand %p740_p3, %p736_p0 }
  0x92   : > { %v338_v3 = vpop.permute.xlu0 %337 }
  0x93   : > { %v340_v6 = vsub.f32 %v333_v4, %v338_v3 }
  0x95   : > { %v341_v9 = vmul.f32 %v340_v6, %v340_v6  ;;  %v362_v16 = vmul.f32 %v361_v13, %v340_v6 }
  0x97   : > { %v366_v18 = vmul.f32 %v362_v16, %v362_v16  ;;  %v363_v22 = vsub.f32 0.0, %v362_v16 }
  0x99   : > { %v367_v23 = vsub.f32 %v366_v18, %v361_v13 }
  0x9a   : > { %v349_v7 = vpop.permute.xlu0 %348 }
  0x9b   : > { %v351_v8 = vsub.f32 %v621_v5, %v349_v7 }
  0x9d   : > { %v352_v10 = vmul.f32 %v351_v8, %v351_v8  ;;  %v370_v17 = vmul.f32 %v361_v13, %v351_v8 }
  0x9f   : > { %v353_v12 = vadd.f32 %v352_v10, %v341_v9  ;;  %v375_v20 = vmul.f32 %v370_v17, %v370_v17  ;;  %v371_v25 = vsub.f32 0.0, %v370_v17 }
  0xa1   : > { %v355_v14 = vmul.f32 %v354_v11, %v353_v12  ;;  %v376_v26 = vsub.f32 %v375_v20, %v361_v13 }
  0xa3   : > { %v356_v15 = vmul.f32 1.442695, %v355_v14 }
  0xa5   : > { %691 = vpow2.f32 %v356_v15 }
  0xab   : > { %v692_v21 = vpop.eup %691 }
  0xac   : > { %v359_v24 = vmul.f32 %v692_v21, %v358_v19 }
  0xae   : > { %v364_v27 = vmul.f32 %v363_v22, %v359_v24  ;;  %v368_v28 = vmul.f32 %v367_v23, %v359_v24  ;;  %v372_v29 = vmul.f32 %v371_v25, %v359_v24  ;;  %360 = vst [vmem:[%s266_s20] sm:$0xff] %v359_v24  ;;  %v377_v30 = vmul.f32 %v376_v26, %v359_v24 }
  0xaf   : > { %744 = shalt.err (!%p741_p5)
}
  0xb0   : > { %632 = dma.vmem_to_hbm [thread:$0]  (%p883_p4), %s418_s21, 128, %s420_s22, %s381_s9   ;;  %365 = vst [vmem:[%s318_s24] sm:$0xff] %v364_v27 }
  0xb1   : > { %369 = vst [vmem:[%s329_s27] sm:$0xff] %v368_v28 }
  0xb2   : > { %623 = vst [vmem:[%s318_s24 + $0x8] sm:$0xff] %v372_v29 }
  0xb3   : > { %624 = vst [vmem:[%s329_s27 + $0x8] sm:$0xff] %v377_v30 }
  0xb4 PF: > { %p638_p6 = scmp.ge.s32.totalorder %s797_s8, 2  ;;  %s437_s28 = sand.u32 1, %s777_s29  }
  0xb5   : > { %s438_s20 = scalar_lea.sflag [#allocation6], %s437_s28 }
  0xb6   : > { %p635_p7 = pnand %p638_p6, %p890_p8 }
  0xb8   : > { %p636_p9 = pneg %p635_p7 }
  0xba   : > { %772 = dma.done.wait (%p636_p9), %s438_s20, 128  }
  0xbb   : > { %774 = vsyncadd (%p636_p9), %s438_s20, 4294967168  ;;  %s33_s8 = sadd.s32 1, %s797_s8   ;;  %s975_s29 = smov %s781_s30 }
  0xbc   : > { %p30_p10 = scmp.ge.s32.totalorder %s33_s8, 6   ;;  %s976_s30 = smov %s785_s0 }
  0xbd   : > { %s977_s0 = smov %s896_s16  ;;  %s978_s7 = smov %s793_s1 }
  0xbe   : > { %s979_s1 = smov %s981_s11  ;;  %32 = sbr.rel (!%p30_p10) target bundleno = 11 (0xb), region = 94 }
  0xc3   :  { %472 = vsyncpa [#allocation6], 1 }
  0xc4   :  { %474 = vsyncpa [#allocation6 + $0x1], 1 }

</bundles_post_ra>
